<compile_context>
chip_gen: v5e
topology: v5e:2x2
jax: 0.10.0
libtpu: 0.0.40
codegen_flags: <defaults>
</compile_context>

<pallas_src>
import math

import jax
import jax.numpy as jnp
from jax.experimental import pallas as pl
from jax.experimental.pallas import tpu as pltpu


def s2tsa_kernel(x_ref, w1_ref, b1_ref, w_ref, o_ref, m_acc, num_acc, den_acc):
    j = pl.program_id(1)                      # sequence-tile index (reduction axis)

    @pl.when(j == 0)
    def _():
        m_acc[...] = jnp.full_like(m_acc, -jnp.inf)
        num_acc[...] = jnp.zeros_like(num_acc)
        den_acc[...] = jnp.zeros_like(den_acc)

    bt, st, H = x_ref.shape
    x = x_ref[...]                            # (bt, st, H), native dtype
    x2 = x.reshape(bt * st, H)                # stack rows -> fill the MXU M dim

    # f = relu(x @ W1^T + b1): run the MXU in the weight dtype (bf16 params =>
    # bf16 MXU on this half of the FLOPs too), accumulate in f32.
    f = jnp.dot(x2.astype(w1_ref.dtype), w1_ref[...],
                preferred_element_type=jnp.float32)
    f = jnp.maximum(f + b1_ref[...], 0.0)     # (bt*st, H) f32

    # logits = f @ W^T.  The second bias is omitted: softmax over the sequence
    # axis is invariant to a per-column shift, so `+ b` cancels exactly.
    logits = jnp.dot(f.astype(w_ref.dtype), w_ref[...],
                     preferred_element_type=jnp.float32).reshape(bt, st, H)

    # Online softmax over the sequence axis; normalization folded into the
    # final reduction, so p = e / den is never materialized.
    m_prev = m_acc[...]                                              # (bt, 1, H)
    m_new = jnp.maximum(m_prev, jnp.max(logits, axis=1, keepdims=True))
    scale = jnp.exp(m_prev - m_new)                                  # 0 on step 0
    e = jnp.exp(logits - m_new)                                      # (bt, st, H) f32
    num_acc[...] = scale * num_acc[...] + jnp.sum(e * x.astype(jnp.float32),
                                                  axis=1, keepdims=True)
    den_acc[...] = scale * den_acc[...] + jnp.sum(e, axis=1, keepdims=True)
    m_acc[...] = m_new

    @pl.when(j == pl.num_programs(1) - 1)
    def _():
        # den >= 1 (the max element contributes exp(0)=1), so the approximate
        # EUP reciprocal is well-conditioned here.
        s = num_acc[...] * pl.reciprocal(den_acc[...], approx=True)  # (bt, 1, H)
        o_ref[...] = s[:, 0, :].astype(o_ref.dtype)                  # lane-dense (bt, H)


def _device_info():
    """(vmem_capacity_bytes, multi_tensorcore) of the attached TPU (best effort)."""
    vmem_cap = 128 * 1024 * 1024
    try:
        info = pltpu.get_tpu_info()
        vmem_cap = int(getattr(info, "vmem_capacity_bytes", vmem_cap))
    except Exception:
        pass
    multi_tc = False
    try:
        kind = jax.devices()[0].device_kind.lower()
        multi_tc = ("v7" in kind) or ("7x" in kind)   # v7x: 2 TensorCores/chip
    except Exception:
        pass
    return vmem_cap, multi_tc


def _pick_tiles(B, S, H, x_itemsize, w_itemsize, vmem_cap, multi_tc):
    """Pick (batch_tile, seq_tile) from the device VMEM budget.

    Rows per step (bt*st) target ~2048 on 128 MiB chips (v5e/v6e) and ~1024 on
    64 MiB chips (v7x), capped by what actually fits next to the resident
    weights and the f32 temporaries."""
    budget = int(0.85 * vmem_cap)
    resident = 2 * H * H * w_itemsize + 8 * H * 4          # weights + bias + accs
    avail = max(budget - resident, 4 * 1024 * 1024)
    per_row = H * (2 * x_itemsize + 8 * 4)                 # x (dbl-buffered) + f32 temps
    max_rows = max(avail // per_row, 8)
    target = 2048 if vmem_cap >= 96 * 1024 * 1024 else 1024
    row_cap = int(min(max_rows, target))

    # Sequence tile: whole S if it fits, else the largest multiple-of-8 divisor
    # of S that fits (keeps the (8,128) block rule and layout-clean reshapes).
    if S <= row_cap:
        st = S
    else:
        st = S
        for c in range(8, row_cap + 1, 8):
            if S % c == 0:
                st = c

    # Batch tile: largest divisor of B with bt*st within budget; bt must be B
    # or a multiple of 8 so the (bt, H) output block satisfies the (8,128)
    # rule.  On multi-TensorCore chips keep >= 2 grid steps on the batch axis
    # so it can shard across cores.
    cap = max(row_cap, st)
    best = None
    for c in range(1, B + 1):
        if B % c:
            continue
        if c != B and c % 8:
            continue
        if c * st > cap:
            continue
        if multi_tc and B >= 2 and B // c < 2:
            continue
        best = c
    if best is None:                     # relax the multi-core preference
        for c in range(1, B + 1):
            if B % c or (c != B and c % 8) or c * st > cap:
                continue
            best = c
    if best is None:                     # last resort: smallest legal tile
        best = 8 if (B % 8 == 0 and B > 8) else B
    return best, st


def _vmem_limit(bt, st, H, x_itemsize, w_itemsize, vmem_cap, weight_bufs):
    needed = (
        2 * bt * st * H * x_itemsize             # x block, double-buffered
        + weight_bufs * 2 * H * H * w_itemsize   # W1^T and W^T
        + weight_bufs * H * 4                    # b1
        + 2 * bt * H * x_itemsize                # output block
        + 3 * bt * H * 4                         # m / num / den scratch
        + 8 * bt * st * H * 4                    # f32 temporaries headroom
    )
    return int(min(max(needed, 32 * 1024 * 1024), int(0.9 * vmem_cap)))


def prepare_params(w1, b1, w, b=None, dtype=None):
    """One-time parameter prep (hoisted out of the per-call path).

    Transposes the PyTorch (out, in) weights to (in, out) so the kernel does a
    plain x @ W, reshapes b1 to (1, H), and optionally casts weights to a
    lower-precision MXU dtype (jnp.bfloat16 -> 2x MXU rate, half resident
    VMEM).  The second bias `b` is dropped: softmax over the sequence axis is
    shift-invariant per hidden column, so it cancels exactly in the output."""
    del b  # mathematically a no-op in this module's forward
    w1_t = jnp.asarray(w1).T
    w_t = jnp.asarray(w).T
    b1_2d = jnp.asarray(b1).reshape(1, -1)
    if dtype is not None:
        w1_t = w1_t.astype(dtype)
        w_t = w_t.astype(dtype)
    return w1_t, b1_2d, w_t


def s2tsa_forward(x, w1_t, b1_2d, w_t, *, block_batch=None, block_seq=None):
    """x: (B, S, H); w1_t, w_t: (H, H), already transposed; b1_2d: (1, H)."""
    B, S, H = x.shape
    out_dtype = x.dtype

    # Pad hidden to a 128-lane multiple only when the relative overhead is
    # small (padding quadruples HBM traffic for tiny H like 32, so skip there).
    # Padded weight columns are zero -> padded outputs are exactly zero.
    Hp = H
    if H > 128 and H % 128 != 0:
        Hp = ((H + 127) // 128) * 128
        pad = Hp - H
        x = jnp.pad(x, ((0, 0), (0, 0), (0, pad)))
        w1_t = jnp.pad(w1_t, ((0, pad), (0, pad)))
        b1_2d = jnp.pad(b1_2d, ((0, 0), (0, pad)))
        w_t = jnp.pad(w_t, ((0, pad), (0, pad)))

    vmem_cap, multi_tc = _device_info()
    bt, st = _pick_tiles(B, S, Hp, x.dtype.itemsize, w1_t.dtype.itemsize,
                         vmem_cap, multi_tc)
    if block_batch is not None:
        bt = block_batch
    if block_seq is not None:
        st = block_seq
    assert B % bt == 0 and S % st == 0, (bt, st)
    grid = (B // bt, S // st)

    def build(single_buffer_weights):
        # Constant-index weights/bias don't need double buffering; Buffered(1)
        # halves their resident VMEM (matters at large H on v7x's 64 MiB).
        res = dict(pipeline_mode=pl.Buffered(1)) if single_buffer_weights else {}
        weight_bufs = 1 if single_buffer_weights else 2
        return pl.pallas_call(
            s2tsa_kernel,
            out_shape=jax.ShapeDtypeStruct((B, Hp), out_dtype),
            grid_spec=pltpu.PrefetchScalarGridSpec(
                num_scalar_prefetch=0,
                grid=grid,
                in_specs=[
                    # x tile; on v5e a deeper pipeline_mode=pl.Buffered(3) here
                    # is a worthwhile sweep if the DMA is still exposed.
                    pl.BlockSpec((bt, st, Hp), lambda i, j: (i, j, 0)),
                    pl.BlockSpec((Hp, Hp), lambda i, j: (0, 0), **res),  # W1^T
                    pl.BlockSpec((1, Hp), lambda i, j: (0, 0), **res),   # b1
                    pl.BlockSpec((Hp, Hp), lambda i, j: (0, 0), **res),  # W^T
                ],
                out_specs=pl.BlockSpec((bt, Hp), lambda i, j: (i, 0)),   # 2-D lane-dense
                scratch_shapes=[pltpu.VMEM((bt, 1, Hp), jnp.float32)] * 3,
            ),
            compiler_params=pltpu.CompilerParams(
                dimension_semantics=("parallel", "arbitrary"),
                vmem_limit_bytes=_vmem_limit(bt, st, Hp, x.dtype.itemsize,
                                             w1_t.dtype.itemsize, vmem_cap,
                                             weight_bufs),
            ),
        )(x, w1_t, b1_2d, w_t)

    try:
        out = build(True)
    except Exception:
        # pipeline_mode=pl.Buffered(1) not supported by this jax build; fall
        # back to default double buffering (correct, just more resident VMEM).
        out = build(False)

    return out[:, :H] if Hp != H else out


def init_params(key, hidden_size):
    """Deterministic Xavier-uniform weights, zero biases (matches module init)."""
    k1, k2 = jax.random.split(key)
    bound = math.sqrt(6.0 / (hidden_size + hidden_size))
    w1 = jax.random.uniform(k1, (hidden_size, hidden_size),
                            minval=-bound, maxval=bound, dtype=jnp.float32)
    w = jax.random.uniform(k2, (hidden_size, hidden_size),
                           minval=-bound, maxval=bound, dtype=jnp.float32)
    b1 = jnp.zeros((hidden_size,), jnp.float32)
    b = jnp.zeros((hidden_size,), jnp.float32)
    return w1, b1, w, b


def s2tsa_reference(x, w1, b1, w, b):
    """Pure-JAX reference of the PyTorch forward (for correctness check)."""
    f = jnp.maximum(jnp.einsum("bsh,oh->bso", x, w1) + b1, 0.0)
    logits = jnp.einsum("bsh,oh->bso", f, w) + b
    p = jax.nn.softmax(logits, axis=-2)
    return jnp.sum(p * x, axis=-2)


if __name__ == "__main__":
    batch, seq_len, hidden = 2, 8, 32

    key = jax.random.PRNGKey(0)
    kx, kp = jax.random.split(key)
    x = jax.random.normal(kx, (batch, seq_len, hidden), dtype=jnp.float32)
    w1, b1, w, b = init_params(kp, hidden)
    ref = s2tsa_reference(x, w1, b1, w, b)

    # f32 path: strict check against the pure-JAX reference (tolerance covers
    # only the approximate EUP reciprocal on the softmax denominator).
    out = s2tsa_forward(x, *prepare_params(w1, b1, w, b))
    out = jax.block_until_ready(out)
    assert out.shape == (batch, hidden)
    assert jnp.allclose(out, ref, atol=2e-3, rtol=2e-3), \
        float(jnp.max(jnp.abs(out - ref)))

    # bf16 path: exercises the production configuration (bf16 x + bf16 params;
    # both matmuls now run on the bf16 MXU path, softmax math stays f32).
    params_bf16 = prepare_params(w1, b1, w, b, dtype=jnp.bfloat16)
    out_bf16 = s2tsa_forward(x.astype(jnp.bfloat16), *params_bf16)
    out_bf16 = jax.block_until_ready(out_bf16).astype(jnp.float32)
    assert jnp.allclose(out_bf16, ref, atol=1e-1, rtol=1e-1), \
        float(jnp.max(jnp.abs(out_bf16 - ref)))

    print("KERNEL_OK")
</pallas_src>

<mosaic_0001>
module attributes {stable_mosaic.version = 11 : i64} {
  func.func @s2tsa_kernel(%arg0: i32, %arg1: i32, %arg2: memref<2x8x32xf32, #tpu.memory_space<vmem>>, %arg3: memref<32x32xf32, #tpu.memory_space<vmem>>, %arg4: memref<1x32xf32, #tpu.memory_space<vmem>>, %arg5: memref<32x32xf32, #tpu.memory_space<vmem>>, %arg6: memref<2x32xf32, #tpu.memory_space<vmem>>, %arg7: memref<2x1x32xf32, #tpu.memory_space<vmem>>, %arg8: memref<2x1x32xf32, #tpu.memory_space<vmem>>, %arg9: memref<2x1x32xf32, #tpu.memory_space<vmem>>) attributes {dimension_semantics = [#tpu.dimension_semantics<parallel>, #tpu.dimension_semantics<arbitrary>], iteration_bounds = array<i64: 1, 1>, scalar_prefetch = 0 : i64, scratch_operands = 3 : i64, tpu.core_type = #tpu.core_type<tc>, window_params = [{transform_indices = @transform_0, window_bounds = array<i64: 2, 8, 32>}, {pipeline_mode = #tpu.pipeline_mode<synchronous>, transform_indices = @transform_1, window_bounds = array<i64: 32, 32>}, {pipeline_mode = #tpu.pipeline_mode<synchronous>, transform_indices = @transform_2, window_bounds = array<i64: 1, 32>}, {pipeline_mode = #tpu.pipeline_mode<synchronous>, transform_indices = @transform_3, window_bounds = array<i64: 32, 32>}, {transform_indices = @transform_4, window_bounds = array<i64: 2, 32>}]} {
    %c0_i32 = arith.constant 0 : i32
    %0 = arith.cmpi eq, %arg1, %c0_i32 : i32
    %1 = arith.extui %0 : i1 to i32
    %c0_i32_0 = arith.constant 0 : i32
    %2 = arith.cmpi ne, %1, %c0_i32_0 : i32
    scf.if %2 {
      %cst_34 = arith.constant 0xFF800000 : f32
      %41 = vector.broadcast %cst_34 : f32 to vector<2x1x32xf32>
      %c0_35 = arith.constant 0 : index
      %c0_36 = arith.constant 0 : index
      %c0_37 = arith.constant 0 : index
      %42 = vector.load %arg7[%c0_35, %c0_36, %c0_37] : memref<2x1x32xf32, #tpu.memory_space<vmem>>, vector<2x1x32xf32>
      tpu.vector_store %arg7[%c0_35, %c0_36, %c0_37], %41 {strides = array<i32>} : memref<2x1x32xf32, #tpu.memory_space<vmem>>, vector<2x1x32xf32>,
      %cst_38 = arith.constant 0.000000e+00 : f32
      %43 = vector.broadcast %cst_38 : f32 to vector<2x1x32xf32>
      %c0_39 = arith.constant 0 : index
      %c0_40 = arith.constant 0 : index
      %c0_41 = arith.constant 0 : index
      %44 = vector.load %arg8[%c0_39, %c0_40, %c0_41] : memref<2x1x32xf32, #tpu.memory_space<vmem>>, vector<2x1x32xf32>
      tpu.vector_store %arg8[%c0_39, %c0_40, %c0_41], %43 {strides = array<i32>} : memref<2x1x32xf32, #tpu.memory_space<vmem>>, vector<2x1x32xf32>,
      %cst_42 = arith.constant 0.000000e+00 : f32
      %45 = vector.broadcast %cst_42 : f32 to vector<2x1x32xf32>
      %c0_43 = arith.constant 0 : index
      %c0_44 = arith.constant 0 : index
      %c0_45 = arith.constant 0 : index
      %46 = vector.load %arg9[%c0_43, %c0_44, %c0_45] : memref<2x1x32xf32, #tpu.memory_space<vmem>>, vector<2x1x32xf32>
      tpu.vector_store %arg9[%c0_43, %c0_44, %c0_45], %45 {strides = array<i32>} : memref<2x1x32xf32, #tpu.memory_space<vmem>>, vector<2x1x32xf32>,
    } else {
    }
    %c0 = arith.constant 0 : index
    %c0_1 = arith.constant 0 : index
    %c0_2 = arith.constant 0 : index
    %3 = vector.load %arg2[%c0, %c0_1, %c0_2] : memref<2x8x32xf32, #tpu.memory_space<vmem>>, vector<2x8x32xf32>
    %4 = vector.shape_cast %3 : vector<2x8x32xf32> to vector<16x32xf32>
    %c0_3 = arith.constant 0 : index
    %c0_4 = arith.constant 0 : index
    %5 = vector.load %arg3[%c0_3, %c0_4] : memref<32x32xf32, #tpu.memory_space<vmem>>, vector<32x32xf32>
    %cst = arith.constant dense<0.000000e+00> : vector<16x32xf32>
    %6 = tpu.matmul %4, %5, %cst {dimension_numbers = #tpu.dot_dimension_numbers<[1], [0], [0], [1], [0, 0, 1, 1], [], []>} : vector<16x32xf32>, vector<32x32xf32>, vector<16x32xf32> -> vector<16x32xf32>
    %c0_5 = arith.constant 0 : index
    %c0_6 = arith.constant 0 : index
    %7 = vector.load %arg4[%c0_5, %c0_6] : memref<1x32xf32, #tpu.memory_space<vmem>>, vector<1x32xf32>
    %8 = vector.broadcast %7 : vector<1x32xf32> to vector<16x32xf32>
    %9 = arith.addf %6, %8 : vector<16x32xf32>
    %cst_7 = arith.constant 0.000000e+00 : f32
    %10 = vector.broadcast %cst_7 : f32 to vector<16x32xf32>
    %11 = arith.maximumf %9, %10 : vector<16x32xf32>
    %c0_8 = arith.constant 0 : index
    %c0_9 = arith.constant 0 : index
    %12 = vector.load %arg5[%c0_8, %c0_9] : memref<32x32xf32, #tpu.memory_space<vmem>>, vector<32x32xf32>
    %cst_10 = arith.constant dense<0.000000e+00> : vector<16x32xf32>
    %13 = tpu.matmul %11, %12, %cst_10 {dimension_numbers = #tpu.dot_dimension_numbers<[1], [0], [0], [1], [0, 0, 1, 1], [], []>} : vector<16x32xf32>, vector<32x32xf32>, vector<16x32xf32> -> vector<16x32xf32>
    %14 = vector.shape_cast %13 : vector<16x32xf32> to vector<2x8x32xf32>
    %c0_11 = arith.constant 0 : index
    %c0_12 = arith.constant 0 : index
    %c0_13 = arith.constant 0 : index
    %15 = vector.load %arg7[%c0_11, %c0_12, %c0_13] : memref<2x1x32xf32, #tpu.memory_space<vmem>>, vector<2x1x32xf32>
    %cst_14 = arith.constant dense<0xFF800000> : vector<2x32xf32>
    %16 = vector.multi_reduction <maximumf>, %14, %cst_14 [1] : vector<2x8x32xf32> to vector<2x32xf32>
    %17 = vector.shape_cast %16 : vector<2x32xf32> to vector<2x1x32xf32>
    %18 = arith.maximumf %15, %17 : vector<2x1x32xf32>
    %19 = arith.subf %15, %18 : vector<2x1x32xf32>
    %20 = math.exp %19 : vector<2x1x32xf32>
    %21 = vector.broadcast %18 : vector<2x1x32xf32> to vector<2x8x32xf32>
    %22 = arith.subf %14, %21 : vector<2x8x32xf32>
    %23 = math.exp %22 : vector<2x8x32xf32>
    %c0_15 = arith.constant 0 : index
    %c0_16 = arith.constant 0 : index
    %c0_17 = arith.constant 0 : index
    %24 = vector.load %arg8[%c0_15, %c0_16, %c0_17] : memref<2x1x32xf32, #tpu.memory_space<vmem>>, vector<2x1x32xf32>
    %25 = arith.mulf %20, %24 : vector<2x1x32xf32>
    %26 = arith.mulf %23, %3 : vector<2x8x32xf32>
    %cst_18 = arith.constant dense<0.000000e+00> : vector<2x32xf32>
    %27 = vector.multi_reduction <add>, %26, %cst_18 [1] : vector<2x8x32xf32> to vector<2x32xf32>
    %28 = vector.shape_cast %27 : vector<2x32xf32> to vector<2x1x32xf32>
    %29 = arith.addf %25, %28 : vector<2x1x32xf32>
    %c0_19 = arith.constant 0 : index
    %c0_20 = arith.constant 0 : index
    %c0_21 = arith.constant 0 : index
    %30 = vector.load %arg8[%c0_19, %c0_20, %c0_21] : memref<2x1x32xf32, #tpu.memory_space<vmem>>, vector<2x1x32xf32>
    tpu.vector_store %arg8[%c0_19, %c0_20, %c0_21], %29 {strides = array<i32>} : memref<2x1x32xf32, #tpu.memory_space<vmem>>, vector<2x1x32xf32>,
    %c0_22 = arith.constant 0 : index
    %c0_23 = arith.constant 0 : index
    %c0_24 = arith.constant 0 : index
    %31 = vector.load %arg9[%c0_22, %c0_23, %c0_24] : memref<2x1x32xf32, #tpu.memory_space<vmem>>, vector<2x1x32xf32>
    %32 = arith.mulf %20, %31 : vector<2x1x32xf32>
    %cst_25 = arith.constant dense<0.000000e+00> : vector<2x32xf32>
    %33 = vector.multi_reduction <add>, %23, %cst_25 [1] : vector<2x8x32xf32> to vector<2x32xf32>
    %34 = vector.shape_cast %33 : vector<2x32xf32> to vector<2x1x32xf32>
    %35 = arith.addf %32, %34 : vector<2x1x32xf32>
    %c0_26 = arith.constant 0 : index
    %c0_27 = arith.constant 0 : index
    %c0_28 = arith.constant 0 : index
    %36 = vector.load %arg9[%c0_26, %c0_27, %c0_28] : memref<2x1x32xf32, #tpu.memory_space<vmem>>, vector<2x1x32xf32>
    tpu.vector_store %arg9[%c0_26, %c0_27, %c0_28], %35 {strides = array<i32>} : memref<2x1x32xf32, #tpu.memory_space<vmem>>, vector<2x1x32xf32>,
    %c0_29 = arith.constant 0 : index
    %c0_30 = arith.constant 0 : index
    %c0_31 = arith.constant 0 : index
    %37 = vector.load %arg7[%c0_29, %c0_30, %c0_31] : memref<2x1x32xf32, #tpu.memory_space<vmem>>, vector<2x1x32xf32>
    tpu.vector_store %arg7[%c0_29, %c0_30, %c0_31], %18 {strides = array<i32>} : memref<2x1x32xf32, #tpu.memory_space<vmem>>, vector<2x1x32xf32>,
    %c0_i32_32 = arith.constant 0 : i32
    %38 = arith.cmpi eq, %arg1, %c0_i32_32 : i32
    %39 = arith.extui %38 : i1 to i32
    %c0_i32_33 = arith.constant 0 : i32
    %40 = arith.cmpi ne, %39, %c0_i32_33 : i32
    scf.if %40 {
      %c0_34 = arith.constant 0 : index
      %c0_35 = arith.constant 0 : index
      %c0_36 = arith.constant 0 : index
      %41 = vector.load %arg8[%c0_34, %c0_35, %c0_36] : memref<2x1x32xf32, #tpu.memory_space<vmem>>, vector<2x1x32xf32>
      %c0_37 = arith.constant 0 : index
      %c0_38 = arith.constant 0 : index
      %c0_39 = arith.constant 0 : index
      %42 = vector.load %arg9[%c0_37, %c0_38, %c0_39] : memref<2x1x32xf32, #tpu.memory_space<vmem>>, vector<2x1x32xf32>
      %43 = tpu.reciprocal %42 {approx = true} : vector<2x1x32xf32> -> vector<2x1x32xf32>
      %44 = arith.mulf %41, %43 : vector<2x1x32xf32>
      %45 = vector.shape_cast %44 : vector<2x1x32xf32> to vector<2x32xf32>
      %c0_40 = arith.constant 0 : index
      %c0_41 = arith.constant 0 : index
      %46 = vector.load %arg6[%c0_40, %c0_41] : memref<2x32xf32, #tpu.memory_space<vmem>>, vector<2x32xf32>
      tpu.vector_store %arg6[%c0_40, %c0_41], %45 {strides = array<i32>} : memref<2x32xf32, #tpu.memory_space<vmem>>, vector<2x32xf32>,
    } else {
    }
    return
  }
  func.func @transform_0(%arg0: i32, %arg1: i32) -> (i32, i32, i32) {
    %c0_i32 = arith.constant 0 : i32
    %c0_i32_0 = arith.constant 0 : i32
    return %arg0, %arg1, %c0_i32 : i32, i32, i32
  }
  func.func @transform_1(%arg0: i32, %arg1: i32) -> (i32, i32) {
    %c0_i32 = arith.constant 0 : i32
    %c0_i32_0 = arith.constant 0 : i32
    %c0_i32_1 = arith.constant 0 : i32
    return %c0_i32, %c0_i32_0 : i32, i32
  }
  func.func @transform_2(%arg0: i32, %arg1: i32) -> (i32, i32) {
    %c0_i32 = arith.constant 0 : i32
    %c0_i32_0 = arith.constant 0 : i32
    %c0_i32_1 = arith.constant 0 : i32
    return %c0_i32, %c0_i32_0 : i32, i32
  }
  func.func @transform_3(%arg0: i32, %arg1: i32) -> (i32, i32) {
    %c0_i32 = arith.constant 0 : i32
    %c0_i32_0 = arith.constant 0 : i32
    %c0_i32_1 = arith.constant 0 : i32
    return %c0_i32, %c0_i32_0 : i32, i32
  }
  func.func @transform_4(%arg0: i32, %arg1: i32) -> (i32, i32) {
    %c0_i32 = arith.constant 0 : i32
    %c0_i32_0 = arith.constant 0 : i32
    return %arg0, %c0_i32 : i32, i32
  }
}

module attributes {stable_mosaic.version = 11 : i64} {
  func.func @s2tsa_kernel(%arg0: i32, %arg1: i32, %arg2: memref<2x8x32xf32, #tpu.memory_space<vmem>>, %arg3: memref<32x32xf32, #tpu.memory_space<vmem>>, %arg4: memref<1x32xf32, #tpu.memory_space<vmem>>, %arg5: memref<32x32xf32, #tpu.memory_space<vmem>>, %arg6: memref<2x32xf32, #tpu.memory_space<vmem>>, %arg7: memref<2x1x32xf32, #tpu.memory_space<vmem>>, %arg8: memref<2x1x32xf32, #tpu.memory_space<vmem>>, %arg9: memref<2x1x32xf32, #tpu.memory_space<vmem>>) attributes {dimension_semantics = [#tpu.dimension_semantics<parallel>, #tpu.dimension_semantics<arbitrary>], iteration_bounds = array<i64: 1, 1>, scalar_prefetch = 0 : i64, scratch_operands = 3 : i64, tpu.core_type = #tpu.core_type<tc>, window_params = [{transform_indices = @transform_0, window_bounds = array<i64: 2, 8, 32>}, {pipeline_mode = #tpu.pipeline_mode<synchronous>, transform_indices = @transform_1, window_bounds = array<i64: 32, 32>}, {pipeline_mode = #tpu.pipeline_mode<synchronous>, transform_indices = @transform_2, window_bounds = array<i64: 1, 32>}, {pipeline_mode = #tpu.pipeline_mode<synchronous>, transform_indices = @transform_3, window_bounds = array<i64: 32, 32>}, {transform_indices = @transform_4, window_bounds = array<i64: 2, 32>}]} {
    %c0_i32 = arith.constant 0 : i32
    %0 = arith.cmpi eq, %arg1, %c0_i32 : i32
    %1 = arith.extui %0 : i1 to i32
    %c0_i32_0 = arith.constant 0 : i32
    %2 = arith.cmpi ne, %1, %c0_i32_0 : i32
    scf.if %2 {
      %cst_34 = arith.constant 0xFF800000 : f32
      %41 = vector.broadcast %cst_34 : f32 to vector<2x1x32xf32>
      %c0_35 = arith.constant 0 : index
      %c0_36 = arith.constant 0 : index
      %c0_37 = arith.constant 0 : index
      %42 = vector.load %arg7[%c0_35, %c0_36, %c0_37] : memref<2x1x32xf32, #tpu.memory_space<vmem>>, vector<2x1x32xf32>
      tpu.vector_store %arg7[%c0_35, %c0_36, %c0_37], %41 {strides = array<i32>} : memref<2x1x32xf32, #tpu.memory_space<vmem>>, vector<2x1x32xf32>,
      %cst_38 = arith.constant 0.000000e+00 : f32
      %43 = vector.broadcast %cst_38 : f32 to vector<2x1x32xf32>
      %c0_39 = arith.constant 0 : index
      %c0_40 = arith.constant 0 : index
      %c0_41 = arith.constant 0 : index
      %44 = vector.load %arg8[%c0_39, %c0_40, %c0_41] : memref<2x1x32xf32, #tpu.memory_space<vmem>>, vector<2x1x32xf32>
      tpu.vector_store %arg8[%c0_39, %c0_40, %c0_41], %43 {strides = array<i32>} : memref<2x1x32xf32, #tpu.memory_space<vmem>>, vector<2x1x32xf32>,
      %cst_42 = arith.constant 0.000000e+00 : f32
      %45 = vector.broadcast %cst_42 : f32 to vector<2x1x32xf32>
      %c0_43 = arith.constant 0 : index
      %c0_44 = arith.constant 0 : index
      %c0_45 = arith.constant 0 : index
      %46 = vector.load %arg9[%c0_43, %c0_44, %c0_45] : memref<2x1x32xf32, #tpu.memory_space<vmem>>, vector<2x1x32xf32>
      tpu.vector_store %arg9[%c0_43, %c0_44, %c0_45], %45 {strides = array<i32>} : memref<2x1x32xf32, #tpu.memory_space<vmem>>, vector<2x1x32xf32>,
    } else {
    }
    %c0 = arith.constant 0 : index
    %c0_1 = arith.constant 0 : index
    %c0_2 = arith.constant 0 : index
    %3 = vector.load %arg2[%c0, %c0_1, %c0_2] : memref<2x8x32xf32, #tpu.memory_space<vmem>>, vector<2x8x32xf32>
    %4 = vector.shape_cast %3 : vector<2x8x32xf32> to vector<16x32xf32>
    %c0_3 = arith.constant 0 : index
    %c0_4 = arith.constant 0 : index
    %5 = vector.load %arg3[%c0_3, %c0_4] : memref<32x32xf32, #tpu.memory_space<vmem>>, vector<32x32xf32>
    %cst = arith.constant dense<0.000000e+00> : vector<16x32xf32>
    %6 = tpu.matmul %4, %5, %cst {dimension_numbers = #tpu.dot_dimension_numbers<[1], [0], [0], [1], [0, 0, 1, 1], [], []>} : vector<16x32xf32>, vector<32x32xf32>, vector<16x32xf32> -> vector<16x32xf32>
    %c0_5 = arith.constant 0 : index
    %c0_6 = arith.constant 0 : index
    %7 = vector.load %arg4[%c0_5, %c0_6] : memref<1x32xf32, #tpu.memory_space<vmem>>, vector<1x32xf32>
    %8 = vector.broadcast %7 : vector<1x32xf32> to vector<16x32xf32>
    %9 = arith.addf %6, %8 : vector<16x32xf32>
    %cst_7 = arith.constant 0.000000e+00 : f32
    %10 = vector.broadcast %cst_7 : f32 to vector<16x32xf32>
    %11 = arith.maximumf %9, %10 : vector<16x32xf32>
    %c0_8 = arith.constant 0 : index
    %c0_9 = arith.constant 0 : index
    %12 = vector.load %arg5[%c0_8, %c0_9] : memref<32x32xf32, #tpu.memory_space<vmem>>, vector<32x32xf32>
    %cst_10 = arith.constant dense<0.000000e+00> : vector<16x32xf32>
    %13 = tpu.matmul %11, %12, %cst_10 {dimension_numbers = #tpu.dot_dimension_numbers<[1], [0], [0], [1], [0, 0, 1, 1], [], []>} : vector<16x32xf32>, vector<32x32xf32>, vector<16x32xf32> -> vector<16x32xf32>
    %14 = vector.shape_cast %13 : vector<16x32xf32> to vector<2x8x32xf32>
    %c0_11 = arith.constant 0 : index
    %c0_12 = arith.constant 0 : index
    %c0_13 = arith.constant 0 : index
    %15 = vector.load %arg7[%c0_11, %c0_12, %c0_13] : memref<2x1x32xf32, #tpu.memory_space<vmem>>, vector<2x1x32xf32>
    %cst_14 = arith.constant dense<0xFF800000> : vector<2x32xf32>
    %16 = vector.multi_reduction <maximumf>, %14, %cst_14 [1] : vector<2x8x32xf32> to vector<2x32xf32>
    %17 = vector.shape_cast %16 : vector<2x32xf32> to vector<2x1x32xf32>
    %18 = arith.maximumf %15, %17 : vector<2x1x32xf32>
    %19 = arith.subf %15, %18 : vector<2x1x32xf32>
    %20 = math.exp %19 : vector<2x1x32xf32>
    %21 = vector.broadcast %18 : vector<2x1x32xf32> to vector<2x8x32xf32>
    %22 = arith.subf %14, %21 : vector<2x8x32xf32>
    %23 = math.exp %22 : vector<2x8x32xf32>
    %c0_15 = arith.constant 0 : index
    %c0_16 = arith.constant 0 : index
    %c0_17 = arith.constant 0 : index
    %24 = vector.load %arg8[%c0_15, %c0_16, %c0_17] : memref<2x1x32xf32, #tpu.memory_space<vmem>>, vector<2x1x32xf32>
    %25 = arith.mulf %20, %24 : vector<2x1x32xf32>
    %26 = arith.mulf %23, %3 : vector<2x8x32xf32>
    %cst_18 = arith.constant dense<0.000000e+00> : vector<2x32xf32>
    %27 = vector.multi_reduction <add>, %26, %cst_18 [1] : vector<2x8x32xf32> to vector<2x32xf32>
    %28 = vector.shape_cast %27 : vector<2x32xf32> to vector<2x1x32xf32>
    %29 = arith.addf %25, %28 : vector<2x1x32xf32>
    %c0_19 = arith.constant 0 : index
    %c0_20 = arith.constant 0 : index
    %c0_21 = arith.constant 0 : index
    %30 = vector.load %arg8[%c0_19, %c0_20, %c0_21] : memref<2x1x32xf32, #tpu.memory_space<vmem>>, vector<2x1x32xf32>
    tpu.vector_store %arg8[%c0_19, %c0_20, %c0_21], %29 {strides = array<i32>} : memref<2x1x32xf32, #tpu.memory_space<vmem>>, vector<2x1x32xf32>,
    %c0_22 = arith.constant 0 : index
    %c0_23 = arith.constant 0 : index
    %c0_24 = arith.constant 0 : index
    %31 = vector.load %arg9[%c0_22, %c0_23, %c0_24] : memref<2x1x32xf32, #tpu.memory_space<vmem>>, vector<2x1x32xf32>
    %32 = arith.mulf %20, %31 : vector<2x1x32xf32>
    %cst_25 = arith.constant dense<0.000000e+00> : vector<2x32xf32>
    %33 = vector.multi_reduction <add>, %23, %cst_25 [1] : vector<2x8x32xf32> to vector<2x32xf32>
    %34 = vector.shape_cast %33 : vector<2x32xf32> to vector<2x1x32xf32>
    %35 = arith.addf %32, %34 : vector<2x1x32xf32>
    %c0_26 = arith.constant 0 : index
    %c0_27 = arith.constant 0 : index
    %c0_28 = arith.constant 0 : index
    %36 = vector.load %arg9[%c0_26, %c0_27, %c0_28] : memref<2x1x32xf32, #tpu.memory_space<vmem>>, vector<2x1x32xf32>
    tpu.vector_store %arg9[%c0_26, %c0_27, %c0_28], %35 {strides = array<i32>} : memref<2x1x32xf32, #tpu.memory_space<vmem>>, vector<2x1x32xf32>,
    %c0_29 = arith.constant 0 : index
    %c0_30 = arith.constant 0 : index
    %c0_31 = arith.constant 0 : index
    %37 = vector.load %arg7[%c0_29, %c0_30, %c0_31] : memref<2x1x32xf32, #tpu.memory_space<vmem>>, vector<2x1x32xf32>
    tpu.vector_store %arg7[%c0_29, %c0_30, %c0_31], %18 {strides = array<i32>} : memref<2x1x32xf32, #tpu.memory_space<vmem>>, vector<2x1x32xf32>,
    %c0_i32_32 = arith.constant 0 : i32
    %38 = arith.cmpi eq, %arg1, %c0_i32_32 : i32
    %39 = arith.extui %38 : i1 to i32
    %c0_i32_33 = arith.constant 0 : i32
    %40 = arith.cmpi ne, %39, %c0_i32_33 : i32
    scf.if %40 {
      %c0_34 = arith.constant 0 : index
      %c0_35 = arith.constant 0 : index
      %c0_36 = arith.constant 0 : index
      %41 = vector.load %arg8[%c0_34, %c0_35, %c0_36] : memref<2x1x32xf32, #tpu.memory_space<vmem>>, vector<2x1x32xf32>
      %c0_37 = arith.constant 0 : index
      %c0_38 = arith.constant 0 : index
      %c0_39 = arith.constant 0 : index
      %42 = vector.load %arg9[%c0_37, %c0_38, %c0_39] : memref<2x1x32xf32, #tpu.memory_space<vmem>>, vector<2x1x32xf32>
      %43 = tpu.reciprocal %42 {approx = true} : vector<2x1x32xf32> -> vector<2x1x32xf32>
      %44 = arith.mulf %41, %43 : vector<2x1x32xf32>
      %45 = vector.shape_cast %44 : vector<2x1x32xf32> to vector<2x32xf32>
      %c0_40 = arith.constant 0 : index
      %c0_41 = arith.constant 0 : index
      %46 = vector.load %arg6[%c0_40, %c0_41] : memref<2x32xf32, #tpu.memory_space<vmem>>, vector<2x32xf32>
      tpu.vector_store %arg6[%c0_40, %c0_41], %45 {strides = array<i32>} : memref<2x32xf32, #tpu.memory_space<vmem>>, vector<2x32xf32>,
    } else {
    }
    return
  }
  func.func @transform_0(%arg0: i32, %arg1: i32) -> (i32, i32, i32) {
    %c0_i32 = arith.constant 0 : i32
    %c0_i32_0 = arith.constant 0 : i32
    return %arg0, %arg1, %c0_i32 : i32, i32, i32
  }
  func.func @transform_1(%arg0: i32, %arg1: i32) -> (i32, i32) {
    %c0_i32 = arith.constant 0 : i32
    %c0_i32_0 = arith.constant 0 : i32
    %c0_i32_1 = arith.constant 0 : i32
    return %c0_i32, %c0_i32_0 : i32, i32
  }
  func.func @transform_2(%arg0: i32, %arg1: i32) -> (i32, i32) {
    %c0_i32 = arith.constant 0 : i32
    %c0_i32_0 = arith.constant 0 : i32
    %c0_i32_1 = arith.constant 0 : i32
    return %c0_i32, %c0_i32_0 : i32, i32
  }
  func.func @transform_3(%arg0: i32, %arg1: i32) -> (i32, i32) {
    %c0_i32 = arith.constant 0 : i32
    %c0_i32_0 = arith.constant 0 : i32
    %c0_i32_1 = arith.constant 0 : i32
    return %c0_i32, %c0_i32_0 : i32, i32
  }
  func.func @transform_4(%arg0: i32, %arg1: i32) -> (i32, i32) {
    %c0_i32 = arith.constant 0 : i32
    %c0_i32_0 = arith.constant 0 : i32
    return %arg0, %c0_i32 : i32, i32
  }
}

</mosaic_0001>

<bundles_post_ra>
// kernel: tpu_custom_call.1
= control target key start
LH: loop header
LB: loop body
LE: loop exit
PB: predicated region body
PF: predicated region fallthrough
CT: control target
= control target key end

     0   :  { %9 = vsyncpa [#allocation6], 0  ;;  %s487_s0 = inlined_call_operand.hbm [shape: f32[2,8,32], index: 0, kind: input, shape index: {}]   ;;  %s488_s1 = inlined_call_operand.hbm [shape: f32[32,32], index: 1, kind: input, shape index: {}]   ;;  %s489_s2 = inlined_call_operand.vmem [shape: f32[1,32], index: 2, kind: input, shape index: {}]   ;;  %s490_s3 = inlined_call_operand.hbm [shape: f32[32,32], index: 3, kind: input, shape index: {}]   ;;  %s491_s4 = inlined_call_operand.hbm [shape: f32[2,32], index: 4, kind: output, shape index: {}]  }
   0x1   :  { %10 = vsyncpa [#allocation9], 0 }
   0x2   :  { %11 = vsyncpa [#allocation7], 0  ;;  %s29_s17 = sshll.u32 %s488_s1, 4  ;;  %s409_s18 = smov [#allocation8]   ;;  %s30_s17 = int_to_ptr.hbm [resolvable:$true] %s29_s17 }
   0x3   :  { %s31_s19 = sshll.u32 %s409_s18, 4  ;;  %s16_s22 = sshll.u32 %s487_s0, 4  ;;  %s32_s19 = int_to_ptr.vmem [resolvable:$true] %s31_s19  ;;  %s17_s22 = int_to_ptr.hbm [resolvable:$true] %s16_s22 }
   0x4   :  { %s410_s23 = smov 128   ;;  %s411_s24 = smov 8  }
   0x5   :  { %37 = dma.hbm_to_vmem [thread:$0]  %s30_s17, 512, %s32_s19, [#allocation9], %s410_s23, %s410_s23, %s411_s24  }
   0x6   :  { %s412_s25 = smov [#allocation5]   ;;  %s44_s29 = sshll.u32 %s490_s3, 4  ;;  %s45_s29 = int_to_ptr.hbm [resolvable:$true] %s44_s29 }
   0x7   :  { %s18_s26 = sshll.u32 %s412_s25, 4  ;;  %s413_s1 = smov [#allocation10]   ;;  %s19_s26 = int_to_ptr.vmem [resolvable:$true] %s18_s26 }
   0x8   :  { %24 = dma.hbm_to_vmem [thread:$0]  %s17_s22, 256, %s19_s26, [#allocation6], %s410_s23, %s410_s23, %s411_s24  }
   0x9   :  { %s46_s30 = sshll.u32 %s413_s1, 4  ;;  %s47_s30 = int_to_ptr.vmem [resolvable:$true] %s46_s30 }
   0xa   :  { %52 = dma.hbm_to_vmem [thread:$0]  %s45_s29, 512, %s47_s30, [#allocation9], %s410_s23, %s410_s23, %s411_s24  }
   0xb   :  { %403 = dma.done.wait [#allocation6], 256  }
   0xc   :  { %404 = vsyncadd [#allocation6], 4294967040 }
   0xd   :  { %405 = dma.done.wait [#allocation9], 1024  }
   0xe   :  { %406 = vsyncadd [#allocation9], 4294966272  ;;  %v81_v0 = vld [vmem:[#allocation8 + $0x18] sm:$0xff]  ;;  %v80_v1 = vld [vmem:[#allocation8 + $0x10] sm:$0xff]  ;;  %vm86_vm0 = vcmask 261120   ;;  %vm69_vm1 = vcmask 253952  }
   0xf   :  { %105 = vmatpush.msra.mxu0 %v81_v0  ;;  %278 = vmatpush.msra.mxu2 %v81_v0  ;;  %v79_v2 = vld [vmem:[#allocation8 + $0x8] sm:$0xff]  ;;  %v121_v3 = vld [vmem:[#allocation10 + $0x18] sm:$0xff]  ;;  %v78_v4 = vld [vmem:[#allocation8] sm:$0xff]  ;;  %v414_v10 = vmov -inf   ;;  %v415_v11 = vmov 0.0   ;;  %s263_s8 = sshll.u32 %s491_s4, 4  ;;  %s264_s8 = int_to_ptr.hbm [resolvable:$true] %s263_s8 }
  0x10   :  { %140 = vmatpush.msra.mxu1 %v121_v3  ;;  %282 = vmatpush.msra.mxu3 %v121_v3  ;;  %v451_v5 = vld [vmem:[#allocation5] sm:$0xff]  ;;  %v453_v6 = vld [vmem:[#allocation5 + $0x8] sm:$0xff]  ;;  %v119_v8 = vld [vmem:[#allocation10 + $0x8] sm:$0xff]  ;;  %70 = vst.msk [vmem:[#allocation2] sm:$0x1] %vm69_vm1, %v414_v10  ;;  %vm254_vm2 = vcmask 254976  }
  0x11   :  { %106 = vmatpush.msra.mxu0 %v80_v1  ;;  %279 = vmatpush.msra.mxu2 %v80_v1  ;;  %v120_v7 = vld [vmem:[#allocation10 + $0x10] sm:$0xff]  ;;  %v118_v9 = vld [vmem:[#allocation10] sm:$0xff]  ;;  %72 = vst.msk [vmem:[#allocation3] sm:$0x1] %vm69_vm1, %v415_v11 }
  0x12   :  { %141 = vmatpush.msra.mxu1 %v120_v7  ;;  %283 = vmatpush.msra.mxu3 %v120_v7  ;;  %74 = vst.msk [vmem:[#allocation4] sm:$0x1] %vm69_vm1, %v415_v11  ;;  %v294_v12 = vld [vmem:[%s489_s2] ss:$0 sm:$0xff]  ;;  %s416_s2 = smov [#allocation11]  }
  0x13   :  { %107 = vmatpush.msra.mxu0 %v79_v2  ;;  %280 = vmatpush.msra.mxu2 %v79_v2  ;;  %71 = vst.msk [vmem:[#allocation2 + $0x1] sm:$0x1] %vm69_vm1, %v414_v10  ;;  %s261_s5 = sshll.u32 %s416_s2, 4  ;;  %s262_s5 = int_to_ptr.vmem [resolvable:$true] %s261_s5 }
  0x14   :  { %142 = vmatpush.msra.mxu1 %v119_v8  ;;  %284 = vmatpush.msra.mxu3 %v119_v8  ;;  %73 = vst.msk [vmem:[#allocation3 + $0x1] sm:$0x1] %vm69_vm1, %v415_v11 }
  0x15   :  { %108 = vmatpush.msra.mxu0 %v78_v4  ;;  %281 = vmatpush.msra.mxu2 %v78_v4  ;;  %75 = vst.msk [vmem:[#allocation4 + $0x1] sm:$0x1] %vm69_vm1, %v415_v11 }
  0x16   :  { %274 = vmatmul.msk.f32.vlgmr.msra.gmra.mxu0 %vm86_vm0, %v451_v5  ;;  %275 = vmatmul.msk.f32.vlgmr.msra.gmra.mxu2 %vm86_vm0, %v453_v6 }
  0x17   :  { %143 = vmatpush.msra.mxu1 %v118_v9  ;;  %285 = vmatpush.msra.mxu3 %v118_v9  ;;  %v151_v26 = vld [vmem:[#allocation2] sm:$0x1] }
  0x18   :  { %v187_v63 = vld [vmem:[#allocation3] sm:$0x1] }
  0x19   :  { %v212_v60 = vld [vmem:[#allocation4] sm:$0x1] }
  0x1a   :  { %v152_v40 = vld [vmem:[#allocation2 + $0x1] sm:$0x1] }
  0x93   :  { %v110_v13 = vpop.f32.mrf.mxu0 }
  0x94   :  { %v111_v14 = vadd.f32 %v294_v12, %v110_v13 }
  0x96   :  { %v116_v15 = vmax.f32 %v111_v14, 0.0 }
  0x98   :  { %276 = vmatmul.msk.f32.vlgmr.msra.gmra.mxu1 %vm86_vm0, %v116_v15 }
  0x99   :  { %v113_v16 = vpop.f32.mrf.mxu2 }
  0x9a   :  { %v114_v17 = vadd.f32 %v294_v12, %v113_v16 }
  0x9c   :  { %v117_v18 = vmax.f32 %v114_v17, 0.0 }
  0x9e   :  { %277 = vmatmul.msk.f32.vlgmr.msra.gmra.mxu3 %vm86_vm0, %v117_v18 }
 0x115   :  { %v145_v19 = vpop.f32.mrf.mxu1 }
 0x116   :  { %v153_v20 = vsel %vm86_vm0, %v145_v19, -inf }
 0x117   :  { %v154_v21 = vrot.slane %v153_v20, 4 }
 0x119   :  { %v155_v22 = vmax.f32 %v153_v20, %v154_v21  ;;  %v213_v20 = vld [vmem:[#allocation4 + $0x1] sm:$0x1] }
 0x11b   :  { %v156_v23 = vrot.slane %v155_v22, 2 }
 0x11d   :  { %v157_v24 = vmax.f32 %v155_v22, %v156_v23  ;;  %v188_v23 = vld [vmem:[#allocation3 + $0x1] sm:$0x1] }
 0x11f   :  { %v158_v25 = vrot.slane %v157_v24, 1 }
 0x121   :  { %v159_v27 = vmax.f32 %v157_v24, %v158_v25  ;;  %v148_v28 = vpop.f32.mrf.mxu3 }
 0x122   :  { %v160_v29 = vsel %vm86_vm0, %v148_v28, -inf }
 0x123   :  { %v167_v30 = vmax.f32 %v151_v26, %v159_v27  ;;  %v161_v31 = vrot.slane %v160_v29, 4 }
 0x125   :  { %v177_v32 = vperm.slane %v167_v30, 0  ;;  %234 = vst.msk [vmem:[#allocation2] sm:$0x1] %vm69_vm1, %v167_v30  ;;  %v162_v33 = vmax.f32 %v160_v29, %v161_v31  ;;  %v169_v39 = vsub.f32 %v151_v26, %v167_v30 }
 0x127   :  { %v181_v34 = vsub.f32 %v145_v19, %v177_v32  ;;  %v163_v35 = vrot.slane %v162_v33, 2  ;;  %v171_v43 = vmul.f32 1.442695, %v169_v39 }
 0x129   :  { %v183_v36 = vmul.f32 1.442695, %v181_v34  ;;  %v164_v37 = vmax.f32 %v162_v33, %v163_v35 }
 0x12b   :  { %295 = vpow2.f32 %v183_v36  ;;  %v165_v38 = vrot.slane %v164_v37, 1 }
 0x12c   :  { %297 = vpow2.f32 %v171_v43 }
 0x12d   :  { %v166_v41 = vmax.f32 %v164_v37, %v165_v38 }
 0x12f   :  { %v168_v42 = vmax.f32 %v152_v40, %v166_v41 }
 0x131   :  { %v296_v44 = vpop.eup %295  ;;  %v178_v45 = vperm.slane %v168_v42, 0  ;;  %235 = vst.msk [vmem:[#allocation2 + $0x1] sm:$0x1] %vm69_vm1, %v168_v42  ;;  %v170_v56 = vsub.f32 %v152_v40, %v168_v42 }
 0x132   :  { %v191_v46 = vmul.f32 %v296_v44, %v451_v5  ;;  %v216_v47 = vsel %vm86_vm0, %v296_v44, 0.0  ;;  %v298_v59 = vpop.eup %297 }
 0x133   :  { %v217_v48 = vrot.slane %v216_v47, 4  ;;  %v182_v49 = vsub.f32 %v148_v28, %v178_v45  ;;  %v173_v0 = vmul.f32 1.442695, %v170_v56  ;;  %v214_v3 = vmul.f32 %v298_v59, %v212_v60 }
 0x134   :  { %v193_v50 = vsel %vm86_vm0, %v191_v46, 0.0  ;;  %v189_v8 = vmul.f32 %v298_v59, %v187_v63 }
 0x135   :  { %v194_v51 = vrot.slane %v193_v50, 4  ;;  %v218_v52 = vadd.f32 %v217_v48, %v216_v47  ;;  %v185_v53 = vmul.f32 1.442695, %v182_v49 }
 0x137   :  { %v195_v54 = vadd.f32 %v194_v51, %v193_v50  ;;  %v219_v55 = vrot.slane %v218_v52, 2  ;;  %299 = vpow2.f32 %v185_v53 }
 0x138   :  { %301 = vpow2.f32 %v173_v0 }
 0x139   :  { %v196_v57 = vrot.slane %v195_v54, 2  ;;  %v220_v58 = vadd.f32 %v219_v55, %v218_v52 }
 0x13b   :  { %v197_v61 = vadd.f32 %v196_v57, %v195_v54  ;;  %v221_v62 = vrot.slane %v220_v58, 1 }
 0x13d   :  { %v300_v1 = vpop.eup %299  ;;  %v198_v2 = vrot.slane %v197_v61, 1  ;;  %v222_v4 = vadd.f32 %v221_v62, %v220_v58 }
 0x13e   :  { %v192_v5 = vmul.f32 %v300_v1, %v453_v6  ;;  %v223_v7 = vsel %vm86_vm0, %v300_v1, 0.0  ;;  %v302_v19 = vpop.eup %301 }
 0x13f   :  { %v199_v9 = vadd.f32 %v198_v2, %v197_v61  ;;  %v230_v10 = vadd.f32 %v222_v4, %v214_v3  ;;  %v224_v11 = vrot.slane %v223_v7, 4  ;;  %v215_v26 = vmul.f32 %v302_v19, %v213_v20 }
 0x140   :  { %v200_v12 = vsel %vm86_vm0, %v192_v5, 0.0  ;;  %v190_v28 = vmul.f32 %v302_v19, %v188_v23 }
 0x141   :  { %v207_v13 = vadd.f32 %v199_v9, %v189_v8  ;;  %232 = vst.msk [vmem:[#allocation4] sm:$0x1] %vm69_vm1, %v230_v10  ;;  %v201_v14 = vrot.slane %v200_v12, 4  ;;  %v225_v15 = vadd.f32 %v224_v11, %v223_v7 }
 0x143   :  { %210 = vst.msk [vmem:[#allocation3] sm:$0x1] %vm69_vm1, %v207_v13  ;;  %v202_v16 = vadd.f32 %v201_v14, %v200_v12  ;;  %v226_v17 = vrot.slane %v225_v15, 2 }
 0x145   :  { %v203_v18 = vrot.slane %v202_v16, 2  ;;  %v227_v6 = vadd.f32 %v226_v17, %v225_v15 }
 0x147   :  { %v204_v21 = vadd.f32 %v203_v18, %v202_v16  ;;  %v228_v22 = vrot.slane %v227_v6, 1 }
 0x148   :  { %v241_v24 = vld [vmem:[#allocation4] sm:$0x1] }
 0x149   :  { %v205_v25 = vrot.slane %v204_v21, 1  ;;  %v229_v27 = vadd.f32 %v228_v22, %v227_v6  ;;  %303 = vrcp.f32 %v241_v24 }
 0x14a   :  { %v239_v33 = vld [vmem:[#allocation3] sm:$0x1] }
 0x14b   :  { %v206_v29 = vadd.f32 %v205_v25, %v204_v21  ;;  %v231_v30 = vadd.f32 %v229_v27, %v215_v26 }
 0x14d   :  { %v208_v31 = vadd.f32 %v206_v29, %v190_v28  ;;  %233 = vst.msk [vmem:[#allocation4 + $0x1] sm:$0x1] %vm69_vm1, %v231_v30 }
 0x14f   :  { %v304_v32 = vpop.eup %303  ;;  %211 = vst.msk [vmem:[#allocation3 + $0x1] sm:$0x1] %vm69_vm1, %v208_v31 }
 0x150   :  { %v245_v34 = vmul.f32 %v304_v32, %v239_v33 }
 0x152   :  { %249 = vst [vmem:[#allocation1] ss:$9 sm:$0xff] %v245_v34 }
 0x154   :  { %v242_v35 = vld [vmem:[#allocation4 + $0x1] sm:$0x1] }
 0x155   :  { %305 = vrcp.f32 %v242_v35 }
 0x156   :  { %v240_v37 = vld [vmem:[#allocation3 + $0x1] sm:$0x1] }
 0x15b   :  { %v306_v36 = vpop.eup %305 }
 0x15c   :  { %v246_v38 = vmul.f32 %v306_v36, %v240_v37 }
 0x15e   :  { %251 = vst [vmem:[#allocation1 + $0x1] ss:$9 sm:$0xff] %v246_v38 }
 0x165   :  { %v252_v39 = vld [vmem:[#allocation1] sm:$0xff] }
 0x166   :  { %255 = vst.msk [vmem:[#allocation11] sm:$0x3] %vm254_vm2, %v252_v39 }
 0x167   :  { %266 = dma.vmem_to_hbm [thread:$0]  %s262_s5, 32, %s264_s8, [#allocation7]  }
 0x168   :  { %407 = dma.done.wait [#allocation7], 32  }
 0x169   :  { %408 = vsyncadd [#allocation7], 4294967264 }
 0x16a   :  { %271 = vsyncpa [#allocation6], 1 }
 0x16b   :  { %272 = vsyncpa [#allocation9], 1 }
 0x16c   :  { %273 = vsyncpa [#allocation7], 1 }

// kernel: tpu_custom_call.1
= control target key start
LH: loop header
LB: loop body
LE: loop exit
PB: predicated region body
PF: predicated region fallthrough
CT: control target
= control target key end

     0   :  { %9 = vsyncpa [#allocation6], 0  ;;  %s487_s0 = inlined_call_operand.hbm [shape: f32[2,8,32], index: 0, kind: input, shape index: {}]   ;;  %s488_s1 = inlined_call_operand.hbm [shape: f32[32,32], index: 1, kind: input, shape index: {}]   ;;  %s489_s2 = inlined_call_operand.vmem [shape: f32[1,32], index: 2, kind: input, shape index: {}]   ;;  %s490_s3 = inlined_call_operand.hbm [shape: f32[32,32], index: 3, kind: input, shape index: {}]   ;;  %s491_s4 = inlined_call_operand.hbm [shape: f32[2,32], index: 4, kind: output, shape index: {}]  }
   0x1   :  { %10 = vsyncpa [#allocation9], 0 }
   0x2   :  { %11 = vsyncpa [#allocation7], 0  ;;  %s29_s17 = sshll.u32 %s488_s1, 4  ;;  %s409_s18 = smov [#allocation8]   ;;  %s30_s17 = int_to_ptr.hbm [resolvable:$true] %s29_s17 }
   0x3   :  { %s31_s19 = sshll.u32 %s409_s18, 4  ;;  %s16_s22 = sshll.u32 %s487_s0, 4  ;;  %s32_s19 = int_to_ptr.vmem [resolvable:$true] %s31_s19  ;;  %s17_s22 = int_to_ptr.hbm [resolvable:$true] %s16_s22 }
   0x4   :  { %s410_s23 = smov 128   ;;  %s411_s24 = smov 8  }
   0x5   :  { %37 = dma.hbm_to_vmem [thread:$0]  %s30_s17, 512, %s32_s19, [#allocation9], %s410_s23, %s410_s23, %s411_s24  }
   0x6   :  { %s412_s25 = smov [#allocation5]   ;;  %s44_s29 = sshll.u32 %s490_s3, 4  ;;  %s45_s29 = int_to_ptr.hbm [resolvable:$true] %s44_s29 }
   0x7   :  { %s18_s26 = sshll.u32 %s412_s25, 4  ;;  %s413_s1 = smov [#allocation10]   ;;  %s19_s26 = int_to_ptr.vmem [resolvable:$true] %s18_s26 }
   0x8   :  { %24 = dma.hbm_to_vmem [thread:$0]  %s17_s22, 256, %s19_s26, [#allocation6], %s410_s23, %s410_s23, %s411_s24  }
   0x9   :  { %s46_s30 = sshll.u32 %s413_s1, 4  ;;  %s47_s30 = int_to_ptr.vmem [resolvable:$true] %s46_s30 }
   0xa   :  { %52 = dma.hbm_to_vmem [thread:$0]  %s45_s29, 512, %s47_s30, [#allocation9], %s410_s23, %s410_s23, %s411_s24  }
   0xb   :  { %403 = dma.done.wait [#allocation6], 256  }
   0xc   :  { %404 = vsyncadd [#allocation6], 4294967040 }
   0xd   :  { %405 = dma.done.wait [#allocation9], 1024  }
   0xe   :  { %406 = vsyncadd [#allocation9], 4294966272  ;;  %v81_v0 = vld [vmem:[#allocation8 + $0x18] sm:$0xff]  ;;  %v80_v1 = vld [vmem:[#allocation8 + $0x10] sm:$0xff]  ;;  %vm86_vm0 = vcmask 261120   ;;  %vm69_vm1 = vcmask 253952  }
   0xf   :  { %105 = vmatpush.msra.mxu0 %v81_v0  ;;  %278 = vmatpush.msra.mxu2 %v81_v0  ;;  %v79_v2 = vld [vmem:[#allocation8 + $0x8] sm:$0xff]  ;;  %v121_v3 = vld [vmem:[#allocation10 + $0x18] sm:$0xff]  ;;  %v78_v4 = vld [vmem:[#allocation8] sm:$0xff]  ;;  %v414_v10 = vmov -inf   ;;  %v415_v11 = vmov 0.0   ;;  %s263_s8 = sshll.u32 %s491_s4, 4  ;;  %s264_s8 = int_to_ptr.hbm [resolvable:$true] %s263_s8 }
  0x10   :  { %140 = vmatpush.msra.mxu1 %v121_v3  ;;  %282 = vmatpush.msra.mxu3 %v121_v3  ;;  %v451_v5 = vld [vmem:[#allocation5] sm:$0xff]  ;;  %v453_v6 = vld [vmem:[#allocation5 + $0x8] sm:$0xff]  ;;  %v119_v8 = vld [vmem:[#allocation10 + $0x8] sm:$0xff]  ;;  %70 = vst.msk [vmem:[#allocation2] sm:$0x1] %vm69_vm1, %v414_v10  ;;  %vm254_vm2 = vcmask 254976  }
  0x11   :  { %106 = vmatpush.msra.mxu0 %v80_v1  ;;  %279 = vmatpush.msra.mxu2 %v80_v1  ;;  %v120_v7 = vld [vmem:[#allocation10 + $0x10] sm:$0xff]  ;;  %v118_v9 = vld [vmem:[#allocation10] sm:$0xff]  ;;  %72 = vst.msk [vmem:[#allocation3] sm:$0x1] %vm69_vm1, %v415_v11 }
  0x12   :  { %141 = vmatpush.msra.mxu1 %v120_v7  ;;  %283 = vmatpush.msra.mxu3 %v120_v7  ;;  %74 = vst.msk [vmem:[#allocation4] sm:$0x1] %vm69_vm1, %v415_v11  ;;  %v294_v12 = vld [vmem:[%s489_s2] ss:$0 sm:$0xff]  ;;  %s416_s2 = smov [#allocation11]  }
  0x13   :  { %107 = vmatpush.msra.mxu0 %v79_v2  ;;  %280 = vmatpush.msra.mxu2 %v79_v2  ;;  %71 = vst.msk [vmem:[#allocation2 + $0x1] sm:$0x1] %vm69_vm1, %v414_v10  ;;  %s261_s5 = sshll.u32 %s416_s2, 4  ;;  %s262_s5 = int_to_ptr.vmem [resolvable:$true] %s261_s5 }
  0x14   :  { %142 = vmatpush.msra.mxu1 %v119_v8  ;;  %284 = vmatpush.msra.mxu3 %v119_v8  ;;  %73 = vst.msk [vmem:[#allocation3 + $0x1] sm:$0x1] %vm69_vm1, %v415_v11 }
  0x15   :  { %108 = vmatpush.msra.mxu0 %v78_v4  ;;  %281 = vmatpush.msra.mxu2 %v78_v4  ;;  %75 = vst.msk [vmem:[#allocation4 + $0x1] sm:$0x1] %vm69_vm1, %v415_v11 }
  0x16   :  { %274 = vmatmul.msk.f32.vlgmr.msra.gmra.mxu0 %vm86_vm0, %v451_v5  ;;  %275 = vmatmul.msk.f32.vlgmr.msra.gmra.mxu2 %vm86_vm0, %v453_v6 }
  0x17   :  { %143 = vmatpush.msra.mxu1 %v118_v9  ;;  %285 = vmatpush.msra.mxu3 %v118_v9  ;;  %v151_v26 = vld [vmem:[#allocation2] sm:$0x1] }
  0x18   :  { %v187_v63 = vld [vmem:[#allocation3] sm:$0x1] }
  0x19   :  { %v212_v60 = vld [vmem:[#allocation4] sm:$0x1] }
  0x1a   :  { %v152_v40 = vld [vmem:[#allocation2 + $0x1] sm:$0x1] }
  0x93   :  { %v110_v13 = vpop.f32.mrf.mxu0 }
  0x94   :  { %v111_v14 = vadd.f32 %v294_v12, %v110_v13 }
  0x96   :  { %v116_v15 = vmax.f32 %v111_v14, 0.0 }
  0x98   :  { %276 = vmatmul.msk.f32.vlgmr.msra.gmra.mxu1 %vm86_vm0, %v116_v15 }
  0x99   :  { %v113_v16 = vpop.f32.mrf.mxu2 }
  0x9a   :  { %v114_v17 = vadd.f32 %v294_v12, %v113_v16 }
  0x9c   :  { %v117_v18 = vmax.f32 %v114_v17, 0.0 }
  0x9e   :  { %277 = vmatmul.msk.f32.vlgmr.msra.gmra.mxu3 %vm86_vm0, %v117_v18 }
 0x115   :  { %v145_v19 = vpop.f32.mrf.mxu1 }
 0x116   :  { %v153_v20 = vsel %vm86_vm0, %v145_v19, -inf }
 0x117   :  { %v154_v21 = vrot.slane %v153_v20, 4 }
 0x119   :  { %v155_v22 = vmax.f32 %v153_v20, %v154_v21  ;;  %v213_v20 = vld [vmem:[#allocation4 + $0x1] sm:$0x1] }
 0x11b   :  { %v156_v23 = vrot.slane %v155_v22, 2 }
 0x11d   :  { %v157_v24 = vmax.f32 %v155_v22, %v156_v23  ;;  %v188_v23 = vld [vmem:[#allocation3 + $0x1] sm:$0x1] }
 0x11f   :  { %v158_v25 = vrot.slane %v157_v24, 1 }
 0x121   :  { %v159_v27 = vmax.f32 %v157_v24, %v158_v25  ;;  %v148_v28 = vpop.f32.mrf.mxu3 }
 0x122   :  { %v160_v29 = vsel %vm86_vm0, %v148_v28, -inf }
 0x123   :  { %v167_v30 = vmax.f32 %v151_v26, %v159_v27  ;;  %v161_v31 = vrot.slane %v160_v29, 4 }
 0x125   :  { %v177_v32 = vperm.slane %v167_v30, 0  ;;  %234 = vst.msk [vmem:[#allocation2] sm:$0x1] %vm69_vm1, %v167_v30  ;;  %v162_v33 = vmax.f32 %v160_v29, %v161_v31  ;;  %v169_v39 = vsub.f32 %v151_v26, %v167_v30 }
 0x127   :  { %v181_v34 = vsub.f32 %v145_v19, %v177_v32  ;;  %v163_v35 = vrot.slane %v162_v33, 2  ;;  %v171_v43 = vmul.f32 1.442695, %v169_v39 }
 0x129   :  { %v183_v36 = vmul.f32 1.442695, %v181_v34  ;;  %v164_v37 = vmax.f32 %v162_v33, %v163_v35 }
 0x12b   :  { %295 = vpow2.f32 %v183_v36  ;;  %v165_v38 = vrot.slane %v164_v37, 1 }
 0x12c   :  { %297 = vpow2.f32 %v171_v43 }
 0x12d   :  { %v166_v41 = vmax.f32 %v164_v37, %v165_v38 }
 0x12f   :  { %v168_v42 = vmax.f32 %v152_v40, %v166_v41 }
 0x131   :  { %v296_v44 = vpop.eup %295  ;;  %v178_v45 = vperm.slane %v168_v42, 0  ;;  %235 = vst.msk [vmem:[#allocation2 + $0x1] sm:$0x1] %vm69_vm1, %v168_v42  ;;  %v170_v56 = vsub.f32 %v152_v40, %v168_v42 }
 0x132   :  { %v191_v46 = vmul.f32 %v296_v44, %v451_v5  ;;  %v216_v47 = vsel %vm86_vm0, %v296_v44, 0.0  ;;  %v298_v59 = vpop.eup %297 }
 0x133   :  { %v217_v48 = vrot.slane %v216_v47, 4  ;;  %v182_v49 = vsub.f32 %v148_v28, %v178_v45  ;;  %v173_v0 = vmul.f32 1.442695, %v170_v56  ;;  %v214_v3 = vmul.f32 %v298_v59, %v212_v60 }
 0x134   :  { %v193_v50 = vsel %vm86_vm0, %v191_v46, 0.0  ;;  %v189_v8 = vmul.f32 %v298_v59, %v187_v63 }
 0x135   :  { %v194_v51 = vrot.slane %v193_v50, 4  ;;  %v218_v52 = vadd.f32 %v217_v48, %v216_v47  ;;  %v185_v53 = vmul.f32 1.442695, %v182_v49 }
 0x137   :  { %v195_v54 = vadd.f32 %v194_v51, %v193_v50  ;;  %v219_v55 = vrot.slane %v218_v52, 2  ;;  %299 = vpow2.f32 %v185_v53 }
 0x138   :  { %301 = vpow2.f32 %v173_v0 }
 0x139   :  { %v196_v57 = vrot.slane %v195_v54, 2  ;;  %v220_v58 = vadd.f32 %v219_v55, %v218_v52 }
 0x13b   :  { %v197_v61 = vadd.f32 %v196_v57, %v195_v54  ;;  %v221_v62 = vrot.slane %v220_v58, 1 }
 0x13d   :  { %v300_v1 = vpop.eup %299  ;;  %v198_v2 = vrot.slane %v197_v61, 1  ;;  %v222_v4 = vadd.f32 %v221_v62, %v220_v58 }
 0x13e   :  { %v192_v5 = vmul.f32 %v300_v1, %v453_v6  ;;  %v223_v7 = vsel %vm86_vm0, %v300_v1, 0.0  ;;  %v302_v19 = vpop.eup %301 }
 0x13f   :  { %v199_v9 = vadd.f32 %v198_v2, %v197_v61  ;;  %v230_v10 = vadd.f32 %v222_v4, %v214_v3  ;;  %v224_v11 = vrot.slane %v223_v7, 4  ;;  %v215_v26 = vmul.f32 %v302_v19, %v213_v20 }
 0x140   :  { %v200_v12 = vsel %vm86_vm0, %v192_v5, 0.0  ;;  %v190_v28 = vmul.f32 %v302_v19, %v188_v23 }
 0x141   :  { %v207_v13 = vadd.f32 %v199_v9, %v189_v8  ;;  %232 = vst.msk [vmem:[#allocation4] sm:$0x1] %vm69_vm1, %v230_v10  ;;  %v201_v14 = vrot.slane %v200_v12, 4  ;;  %v225_v15 = vadd.f32 %v224_v11, %v223_v7 }
 0x143   :  { %210 = vst.msk [vmem:[#allocation3] sm:$0x1] %vm69_vm1, %v207_v13  ;;  %v202_v16 = vadd.f32 %v201_v14, %v200_v12  ;;  %v226_v17 = vrot.slane %v225_v15, 2 }
 0x145   :  { %v203_v18 = vrot.slane %v202_v16, 2  ;;  %v227_v6 = vadd.f32 %v226_v17, %v225_v15 }
 0x147   :  { %v204_v21 = vadd.f32 %v203_v18, %v202_v16  ;;  %v228_v22 = vrot.slane %v227_v6, 1 }
 0x148   :  { %v241_v24 = vld [vmem:[#allocation4] sm:$0x1] }
 0x149   :  { %v205_v25 = vrot.slane %v204_v21, 1  ;;  %v229_v27 = vadd.f32 %v228_v22, %v227_v6  ;;  %303 = vrcp.f32 %v241_v24 }
 0x14a   :  { %v239_v33 = vld [vmem:[#allocation3] sm:$0x1] }
 0x14b   :  { %v206_v29 = vadd.f32 %v205_v25, %v204_v21  ;;  %v231_v30 = vadd.f32 %v229_v27, %v215_v26 }
 0x14d   :  { %v208_v31 = vadd.f32 %v206_v29, %v190_v28  ;;  %233 = vst.msk [vmem:[#allocation4 + $0x1] sm:$0x1] %vm69_vm1, %v231_v30 }
 0x14f   :  { %v304_v32 = vpop.eup %303  ;;  %211 = vst.msk [vmem:[#allocation3 + $0x1] sm:$0x1] %vm69_vm1, %v208_v31 }
 0x150   :  { %v245_v34 = vmul.f32 %v304_v32, %v239_v33 }
 0x152   :  { %249 = vst [vmem:[#allocation1] ss:$9 sm:$0xff] %v245_v34 }
 0x154   :  { %v242_v35 = vld [vmem:[#allocation4 + $0x1] sm:$0x1] }
 0x155   :  { %305 = vrcp.f32 %v242_v35 }
 0x156   :  { %v240_v37 = vld [vmem:[#allocation3 + $0x1] sm:$0x1] }
 0x15b   :  { %v306_v36 = vpop.eup %305 }
 0x15c   :  { %v246_v38 = vmul.f32 %v306_v36, %v240_v37 }
 0x15e   :  { %251 = vst [vmem:[#allocation1 + $0x1] ss:$9 sm:$0xff] %v246_v38 }
 0x165   :  { %v252_v39 = vld [vmem:[#allocation1] sm:$0xff] }
 0x166   :  { %255 = vst.msk [vmem:[#allocation11] sm:$0x3] %vm254_vm2, %v252_v39 }
 0x167   :  { %266 = dma.vmem_to_hbm [thread:$0]  %s262_s5, 32, %s264_s8, [#allocation7]  }
 0x168   :  { %407 = dma.done.wait [#allocation7], 32  }
 0x169   :  { %408 = vsyncadd [#allocation7], 4294967264 }
 0x16a   :  { %271 = vsyncpa [#allocation6], 1 }
 0x16b   :  { %272 = vsyncpa [#allocation9], 1 }
 0x16c   :  { %273 = vsyncpa [#allocation7], 1 }

</bundles_post_ra>
